<compile_context>
chip_gen: v5e
topology: v5e:2x2
jax: 0.10.0
libtpu: 0.0.40
codegen_flags: <defaults>
</compile_context>

<pallas_src>
import functools
from typing import NamedTuple

import jax
import jax.numpy as jnp
from jax.experimental import pallas as pl
from jax.experimental.pallas import tpu as pltpu


def _round_up(x, m):
    return (x + m - 1) // m * m


def _vmem_capacity_bytes():
    # Physical VMEM per TensorCore: 128 MiB on v5e/v6e, 64 MiB on v7x.
    try:
        return int(pltpu.get_tpu_info().vmem_capacity_bytes)
    except Exception:
        return 64 * 1024 * 1024  # conservative default (v7x)


# --------------------------------------------------------------------------
# Kernels
# --------------------------------------------------------------------------
def _mlp_fused_kernel(x_ref, w1_ref, b1_ref, w2_ref, b2_ref, o_ref):
    # x:(tb,F) bf16 streamed; w1:(F,H) bf16, b1:(1,H) f32, w2:(H,O) bf16,
    # b2:(1,O) f32 are VMEM-resident (constant block index across the grid).
    h = jnp.dot(x_ref[...], w1_ref[...], preferred_element_type=jnp.float32)
    h = jnp.maximum(h + b1_ref[...], 0.0)                 # f32 bias + ReLU
    y = jnp.dot(h.astype(w2_ref.dtype), w2_ref[...],
                preferred_element_type=jnp.float32)
    o_ref[...] = (y + b2_ref[...]).astype(o_ref.dtype)


def _mlp_hchunk_kernel(x_ref, w1_ref, b1_ref, w2_ref, b2_ref, o_ref, acc_ref):
    # Grid = (batch tiles, H chunks); the H axis is a reduction ("arbitrary",
    # last). W1/W2 are streamed per H-chunk; acc_ref is a (tb, O_pad) f32
    # accumulator that lives across the H axis.
    k = pl.program_id(1)

    @pl.when(k == 0)
    def _():
        acc_ref[...] = jnp.zeros_like(acc_ref)

    h = jnp.dot(x_ref[...], w1_ref[...], preferred_element_type=jnp.float32)
    h = jnp.maximum(h + b1_ref[...], 0.0)                 # per-chunk bias + ReLU
    acc_ref[...] += jnp.dot(h.astype(w2_ref.dtype), w2_ref[...],
                            preferred_element_type=jnp.float32)

    @pl.when(k == pl.num_programs(1) - 1)
    def _():
        o_ref[...] = (acc_ref[...] + b2_ref[...]).astype(o_ref.dtype)


# --------------------------------------------------------------------------
# Parameter preparation (done ONCE, outside the per-forward path)
# --------------------------------------------------------------------------
class MLPParams(NamedTuple):
    w1: jax.Array   # (F_pad, H_pad) bf16
    b1: jax.Array   # (1, H_pad)     f32
    w2: jax.Array   # (H_pad, O_pad) bf16
    b2: jax.Array   # (1, O_pad)     f32


def prepare_params(w1, b1, w2, b2):
    """Pad feature axes to multiples of 128 (lane-dense, MXU friendly) and
    cast weights to bf16, once. Returns (MLPParams, out_features)."""
    F_in, H = w1.shape
    H2, O = w2.shape
    assert H2 == H, "w1/w2 hidden dims must match"
    F_pad, H_pad, O_pad = (_round_up(d, 128) for d in (F_in, H, O))
    w1p = jnp.zeros((F_pad, H_pad), jnp.bfloat16).at[:F_in, :H].set(
        w1.astype(jnp.bfloat16))
    b1p = jnp.zeros((1, H_pad), jnp.float32).at[:, :H].set(
        b1.reshape(1, -1).astype(jnp.float32))
    w2p = jnp.zeros((H_pad, O_pad), jnp.bfloat16).at[:H, :O].set(
        w2.astype(jnp.bfloat16))
    b2p = jnp.zeros((1, O_pad), jnp.float32).at[:, :O].set(
        b2.reshape(1, -1).astype(jnp.float32))
    return MLPParams(w1p, b1p, w2p, b2p), O


# --------------------------------------------------------------------------
# Forward
# --------------------------------------------------------------------------
@functools.partial(
    jax.jit, static_argnames=("out_features", "tile_b", "h_chunk", "out_dtype"))
def mlp_forward(x, params, *, out_features, tile_b=512, h_chunk=None,
                out_dtype=jnp.float32):
    w1p, b1p, w2p, b2p = params
    B, F_in = x.shape
    F_pad, H_pad = w1p.shape
    O_pad = w2p.shape[1]
    assert F_in <= F_pad, "x feature dim exceeds prepared params"

    # ---- batch tiling: 16-row aligned (bf16 vregs pack (16,128)) ----------
    B16 = _round_up(B, 16)
    tb = _round_up(min(tile_b, B16), 16)
    # Give the "parallel" batch axis >=2 steps so both v7x TensorCores get
    # work; one extra grid step (~0.35us) is negligible on 1-TC chips.
    if tb >= B16 and B16 >= 256:
        tb = _round_up(pl.cdiv(B16, 2), 16)
    B_pad = _round_up(B16, tb)

    # ---- x cast/pad: no extra HBM pass when already aligned ---------------
    xp = x.astype(jnp.bfloat16)
    if F_in != F_pad or B != B_pad:
        xp = jnp.pad(xp, ((0, B_pad - B), (0, F_pad - F_in)))

    out_bytes = jnp.dtype(out_dtype).itemsize
    vmem_cap = int(0.75 * _vmem_capacity_bytes())

    # Pallas double-buffers inputs even when their block index never changes,
    # so resident weights/biases are counted at 2x. (pl.Buffered(1) on those
    # specs would halve this; kept off here for lowering safety.)
    weight_bytes = 2 * (2 * F_pad * H_pad + 2 * H_pad * O_pad
                        + 4 * (H_pad + O_pad))
    fused_need = (weight_bytes
                  + 2 * (tb * F_pad * 2)            # x tiles (double-buffered)
                  + 2 * (tb * O_pad * out_bytes)    # out tiles
                  + tb * H_pad * (4 + 2)            # f32 h + bf16 recast
                  + tb * O_pad * 4)                 # f32 y

    if h_chunk is None and fused_need > min(vmem_cap, 28 * 1024 * 1024):
        # Hidden dim too large to keep W1/W2 resident: stream it in chunks.
        # Prefer >=256-wide chunks so the 256-wide v6e/v7x MXU stays full.
        for cand in (1024, 512, 256, 128):
            if H_pad % cand == 0:
                h_chunk = cand
                break

    flops = 2 * B_pad * (F_pad * H_pad + H_pad * O_pad)
    bytes_accessed = (B_pad * F_pad * 2 + F_pad * H_pad * 2 + H_pad * O_pad * 2
                      + (H_pad + O_pad) * 4 + B_pad * O_pad * out_bytes)
    cost = pl.CostEstimate(flops=flops, transcendentals=0,
                           bytes_accessed=bytes_accessed)

    if h_chunk is None:
        # -------- fused path: weights VMEM-resident across the batch grid ---
        vmem_limit = int(min(max(int(1.5 * fused_need), 16 * 1024 * 1024),
                             vmem_cap))
        out_pad = pl.pallas_call(
            _mlp_fused_kernel,
            out_shape=jax.ShapeDtypeStruct((B_pad, O_pad), out_dtype),
            grid=(B_pad // tb,),
            in_specs=[
                pl.BlockSpec((tb, F_pad), lambda i: (i, 0)),     # streamed x
                pl.BlockSpec((F_pad, H_pad), lambda i: (0, 0)),  # resident W1
                pl.BlockSpec((1, H_pad), lambda i: (0, 0)),      # resident b1
                pl.BlockSpec((H_pad, O_pad), lambda i: (0, 0)),  # resident W2
                pl.BlockSpec((1, O_pad), lambda i: (0, 0)),      # resident b2
            ],
            out_specs=pl.BlockSpec((tb, O_pad), lambda i: (i, 0)),
            compiler_params=pltpu.CompilerParams(
                dimension_semantics=("parallel",),
                vmem_limit_bytes=vmem_limit),
            cost_estimate=cost,
        )(xp, w1p, b1p, w2p, b2p)
    else:
        # -------- H-chunked reduction path (bounds live VMEM, e.g. on v7x) --
        hc = int(h_chunk)
        assert H_pad % hc == 0, f"h_chunk={hc} must divide padded hidden {H_pad}"
        chunk_need = (2 * (2 * F_pad * hc + 4 * hc + 2 * hc * O_pad)  # W1/b1/W2 chunks x2
                      + 2 * 4 * O_pad                                  # b2 x2
                      + 2 * (tb * F_pad * 2)                           # x tiles
                      + 2 * (tb * O_pad * out_bytes)                   # out tiles
                      + tb * O_pad * 4                                 # f32 accumulator
                      + tb * hc * (4 + 2))                             # f32 h + bf16 recast
        vmem_limit = int(min(max(int(1.5 * chunk_need), 16 * 1024 * 1024),
                             vmem_cap))
        out_pad = pl.pallas_call(
            _mlp_hchunk_kernel,
            out_shape=jax.ShapeDtypeStruct((B_pad, O_pad), out_dtype),
            grid=(B_pad // tb, H_pad // hc),
            in_specs=[
                pl.BlockSpec((tb, F_pad), lambda i, k: (i, 0)),   # x (reused over k)
                pl.BlockSpec((F_pad, hc), lambda i, k: (0, k)),   # W1 chunk
                pl.BlockSpec((1, hc), lambda i, k: (0, k)),       # b1 chunk
                pl.BlockSpec((hc, O_pad), lambda i, k: (k, 0)),   # W2 chunk
                pl.BlockSpec((1, O_pad), lambda i, k: (0, 0)),    # b2
            ],
            out_specs=pl.BlockSpec((tb, O_pad), lambda i, k: (i, 0)),
            scratch_shapes=[pltpu.VMEM((tb, O_pad), jnp.float32)],
            compiler_params=pltpu.CompilerParams(
                dimension_semantics=("parallel", "arbitrary"),
                vmem_limit_bytes=vmem_limit),
            cost_estimate=cost,
        )(xp, w1p, b1p, w2p, b2p)

    if B_pad == B and O_pad == out_features:
        return out_pad                    # no padding added -> no extra slice pass
    return out_pad[:B, :out_features]


# --------------------------------------------------------------------------
# Small-shape fast path / dispatcher
# --------------------------------------------------------------------------
def mlp_reference(x, w1, b1, w2, b2):
    """Plain XLA forward (f32). Used as correctness reference and as the
    fast path for tiny shapes where pad + pallas_call overhead dominates."""
    return jnp.maximum(x @ w1 + b1, 0.0) @ w2 + b2


def mlp_apply(x, w1, b1, w2, b2, *, prepared=None, force_pallas=False, **kw):
    B, F_in = x.shape
    H, O = w1.shape[1], w2.shape[1]
    flops = 2 * B * (F_in * H + H * O)
    if not force_pallas and flops < (1 << 22):    # ~4 MFLOP: overhead-bound
        return mlp_reference(x, w1, b1, w2, b2)
    if prepared is None:
        prepared, O = prepare_params(w1, b1, w2, b2)
    return mlp_forward(x, prepared, out_features=O, **kw)


def init_linear_params(key, fan_in, fan_out, dtype=jnp.float32):
    # Mimics torch.nn.Linear default init: U(-1/sqrt(fan_in), 1/sqrt(fan_in)).
    kw, kb = jax.random.split(key)
    bound = 1.0 / jnp.sqrt(jnp.array(fan_in, dtype=jnp.float32))
    w = jax.random.uniform(kw, (fan_in, fan_out), dtype, -bound, bound)
    b = jax.random.uniform(kb, (1, fan_out), dtype, -bound, bound)
    return w, b


if __name__ == "__main__":
    key = jax.random.PRNGKey(0)
    kx, k1, k2, k3, k4, k5 = jax.random.split(key, 6)

    # ---- Tiny demo at the module's expected scale (fused Pallas path) -----
    input_size, hidden_size, output_size, batch = 16, 32, 8, 8
    x = jax.random.normal(kx, (batch, input_size), jnp.float32)
    w1, b1 = init_linear_params(k1, input_size, hidden_size)
    w2, b2 = init_linear_params(k2, hidden_size, output_size)

    params, out_features = prepare_params(w1, b1, w2, b2)   # pad/cast once
    out = mlp_forward(x, params, out_features=out_features)
    jax.block_until_ready(out)
    assert out.shape == (batch, output_size)

    # Reference with the same bf16-rounded operands and f32 accumulation.
    xr = x.astype(jnp.bfloat16).astype(jnp.float32)
    w1r = w1.astype(jnp.bfloat16).astype(jnp.float32)
    w2r = w2.astype(jnp.bfloat16).astype(jnp.float32)
    ref = jnp.maximum(xr @ w1r + b1, 0.0) @ w2r + b2
    assert jnp.allclose(out, ref, atol=1e-2, rtol=1e-2)
    # Sanity vs. full-f32 math (bf16 rounding only).
    assert jnp.allclose(out, mlp_reference(x, w1, b1, w2, b2),
                        atol=5e-2, rtol=5e-2)

    # ---- Medium shapes: exercise the H-chunked reduction path -------------
    B2, F2, H2, O2 = 256, 128, 512, 128
    x2 = jax.random.normal(k3, (B2, F2), jnp.float32)
    w1b, b1b = init_linear_params(k4, F2, H2)
    w2b, b2b = init_linear_params(k5, H2, O2)
    params2, of2 = prepare_params(w1b, b1b, w2b, b2b)
    out2 = mlp_forward(x2, params2, out_features=of2, tile_b=128, h_chunk=256)
    jax.block_until_ready(out2)
    assert out2.shape == (B2, O2)
    ref2 = mlp_reference(x2, w1b, b1b, w2b, b2b)
    assert jnp.allclose(out2, ref2, atol=7e-2, rtol=7e-2)

    print("KERNEL_OK")
</pallas_src>

<mosaic_0001>
module attributes {stable_mosaic.version = 11 : i64} {
  func.func @_mlp_fused_kernel(%arg0: i32, %arg1: memref<16x128xbf16, #tpu.memory_space<vmem>>, %arg2: memref<128x128xbf16, #tpu.memory_space<vmem>>, %arg3: memref<1x128xf32, #tpu.memory_space<vmem>>, %arg4: memref<128x128xbf16, #tpu.memory_space<vmem>>, %arg5: memref<1x128xf32, #tpu.memory_space<vmem>>, %arg6: memref<16x128xf32, #tpu.memory_space<vmem>>) attributes {dimension_semantics = [#tpu.dimension_semantics<parallel>], iteration_bounds = array<i64: 1>, scalar_prefetch = 0 : i64, scratch_operands = 0 : i64, tpu.core_type = #tpu.core_type<tc>, window_params = [{transform_indices = @transform_0, window_bounds = array<i64: 16, 128>}, {pipeline_mode = #tpu.pipeline_mode<synchronous>, transform_indices = @transform_1, window_bounds = array<i64: 128, 128>}, {pipeline_mode = #tpu.pipeline_mode<synchronous>, transform_indices = @transform_2, window_bounds = array<i64: 1, 128>}, {pipeline_mode = #tpu.pipeline_mode<synchronous>, transform_indices = @transform_3, window_bounds = array<i64: 128, 128>}, {pipeline_mode = #tpu.pipeline_mode<synchronous>, transform_indices = @transform_4, window_bounds = array<i64: 1, 128>}, {transform_indices = @transform_5, window_bounds = array<i64: 16, 128>}]} {
    %c0 = arith.constant 0 : index
    %c0_0 = arith.constant 0 : index
    %0 = vector.load %arg1[%c0, %c0_0] : memref<16x128xbf16, #tpu.memory_space<vmem>>, vector<16x128xbf16>
    %c0_1 = arith.constant 0 : index
    %c0_2 = arith.constant 0 : index
    %1 = vector.load %arg2[%c0_1, %c0_2] : memref<128x128xbf16, #tpu.memory_space<vmem>>, vector<128x128xbf16>
    %cst = arith.constant dense<0.000000e+00> : vector<16x128xf32>
    %2 = tpu.matmul %0, %1, %cst {dimension_numbers = #tpu.dot_dimension_numbers<[1], [0], [0], [1], [0, 0, 1, 1], [], []>} : vector<16x128xbf16>, vector<128x128xbf16>, vector<16x128xf32> -> vector<16x128xf32>
    %c0_3 = arith.constant 0 : index
    %c0_4 = arith.constant 0 : index
    %3 = vector.load %arg3[%c0_3, %c0_4] : memref<1x128xf32, #tpu.memory_space<vmem>>, vector<1x128xf32>
    %4 = vector.broadcast %3 : vector<1x128xf32> to vector<16x128xf32>
    %5 = arith.addf %2, %4 : vector<16x128xf32>
    %cst_5 = arith.constant 0.000000e+00 : f32
    %6 = vector.broadcast %cst_5 : f32 to vector<16x128xf32>
    %7 = arith.maximumf %5, %6 : vector<16x128xf32>
    %8 = arith.truncf %7 : vector<16x128xf32> to vector<16x128xbf16>
    %c0_6 = arith.constant 0 : index
    %c0_7 = arith.constant 0 : index
    %9 = vector.load %arg4[%c0_6, %c0_7] : memref<128x128xbf16, #tpu.memory_space<vmem>>, vector<128x128xbf16>
    %cst_8 = arith.constant dense<0.000000e+00> : vector<16x128xf32>
    %10 = tpu.matmul %8, %9, %cst_8 {dimension_numbers = #tpu.dot_dimension_numbers<[1], [0], [0], [1], [0, 0, 1, 1], [], []>} : vector<16x128xbf16>, vector<128x128xbf16>, vector<16x128xf32> -> vector<16x128xf32>
    %c0_9 = arith.constant 0 : index
    %c0_10 = arith.constant 0 : index
    %11 = vector.load %arg5[%c0_9, %c0_10] : memref<1x128xf32, #tpu.memory_space<vmem>>, vector<1x128xf32>
    %12 = vector.broadcast %11 : vector<1x128xf32> to vector<16x128xf32>
    %13 = arith.addf %10, %12 : vector<16x128xf32>
    %c0_11 = arith.constant 0 : index
    %c0_12 = arith.constant 0 : index
    %14 = vector.load %arg6[%c0_11, %c0_12] : memref<16x128xf32, #tpu.memory_space<vmem>>, vector<16x128xf32>
    tpu.vector_store %arg6[%c0_11, %c0_12], %13 {strides = array<i32>} : memref<16x128xf32, #tpu.memory_space<vmem>>, vector<16x128xf32>,
    return
  }
  func.func @transform_0(%arg0: i32) -> (i32, i32) {
    %c0_i32 = arith.constant 0 : i32
    %c0_i32_0 = arith.constant 0 : i32
    return %arg0, %c0_i32 : i32, i32
  }
  func.func @transform_1(%arg0: i32) -> (i32, i32) {
    %c0_i32 = arith.constant 0 : i32
    %c0_i32_0 = arith.constant 0 : i32
    %c0_i32_1 = arith.constant 0 : i32
    return %c0_i32, %c0_i32_0 : i32, i32
  }
  func.func @transform_2(%arg0: i32) -> (i32, i32) {
    %c0_i32 = arith.constant 0 : i32
    %c0_i32_0 = arith.constant 0 : i32
    %c0_i32_1 = arith.constant 0 : i32
    return %c0_i32, %c0_i32_0 : i32, i32
  }
  func.func @transform_3(%arg0: i32) -> (i32, i32) {
    %c0_i32 = arith.constant 0 : i32
    %c0_i32_0 = arith.constant 0 : i32
    %c0_i32_1 = arith.constant 0 : i32
    return %c0_i32, %c0_i32_0 : i32, i32
  }
  func.func @transform_4(%arg0: i32) -> (i32, i32) {
    %c0_i32 = arith.constant 0 : i32
    %c0_i32_0 = arith.constant 0 : i32
    %c0_i32_1 = arith.constant 0 : i32
    return %c0_i32, %c0_i32_0 : i32, i32
  }
  func.func @transform_5(%arg0: i32) -> (i32, i32) {
    %c0_i32 = arith.constant 0 : i32
    %c0_i32_0 = arith.constant 0 : i32
    return %arg0, %c0_i32 : i32, i32
  }
}

</mosaic_0001>

<bundles_post_ra>
// kernel: mlp_forward.1
= control target key start
LH: loop header
LB: loop body
LE: loop exit
PB: predicated region body
PF: predicated region fallthrough
CT: control target
= control target key end

     0   :  { %10 = vsyncpa [#allocation3], 0  ;;  %s433_s0 = inlined_call_operand.vmem [shape: bf16[16,128], index: 0, kind: input, shape index: {}]   ;;  %s434_s1 = inlined_call_operand.hbm [shape: bf16[128,128], index: 1, kind: input, shape index: {}]   ;;  %s435_s2 = inlined_call_operand.vmem [shape: f32[1,128], index: 2, kind: input, shape index: {}]   ;;  %s436_s3 = inlined_call_operand.hbm [shape: bf16[128,128], index: 3, kind: input, shape index: {}]   ;;  %s437_s4 = inlined_call_operand.vmem [shape: f32[1,128], index: 4, kind: input, shape index: {}]   ;;  %s438_s5 = inlined_call_operand.vmem [shape: f32[16,128], index: 5, kind: output, shape index: {}]  }
   0x1   :  { %s18_s20 = sshll.u32 %s434_s1, 4  ;;  %s19_s20 = int_to_ptr.hbm [resolvable:$true] %s18_s20 }
   0x2   :  { %11 = vsyncpa [#allocation5], 0  ;;  %s378_s21 = smov [#allocation2]   ;;  %s33_s25 = sshll.u32 %s436_s3, 4  ;;  %s34_s25 = int_to_ptr.hbm [resolvable:$true] %s33_s25 }
   0x3   :  { %s20_s22 = sshll.u32 %s378_s21, 4  ;;  %s379_s26 = smov 64   ;;  %s21_s22 = int_to_ptr.vmem [resolvable:$true] %s20_s22 }
   0x4   :  { %s380_s27 = smov 4   ;;  %s381_s28 = smov [#allocation4]  }
   0x5   :  { %26 = dma.hbm_to_vmem [thread:$0]  %s19_s20, 1024, %s21_s22, [#allocation3], %s379_s26, %s379_s26, %s380_s27  }
   0x6   :  { %s35_s29 = sshll.u32 %s381_s28, 4  ;;  %s36_s29 = int_to_ptr.vmem [resolvable:$true] %s35_s29 }
   0x7   :  { %41 = dma.hbm_to_vmem [thread:$0]  %s34_s25, 1024, %s36_s29, [#allocation5], %s379_s26, %s379_s26, %s380_s27  }
   0x8   :  { %374 = dma.done.wait [#allocation3], 1024  }
   0x9   :  { %375 = vsyncadd [#allocation3], 4294966272 }
   0xa   :  { %376 = dma.done.wait [#allocation5], 1024  }
   0xb   :  { %377 = vsyncadd [#allocation5], 4294966272  ;;  %v311_v0 = vld [vmem:[#allocation2 + $0x38] sm:$0xff]  ;;  %v310_v1 = vld [vmem:[#allocation2 + $0x30] sm:$0xff] }
   0xc   :  { %128 = vmatpush.bf16.msra.mxu0 %v311_v0  ;;  %v319_v2 = vld [vmem:[#allocation4 + $0x38] sm:$0xff]  ;;  %v318_v3 = vld [vmem:[#allocation4 + $0x30] sm:$0xff]  ;;  %v309_v4 = vld [vmem:[#allocation2 + $0x28] sm:$0xff] }
   0xd   :  { %213 = vmatpush.bf16.msra.mxu1 %v319_v2  ;;  %v317_v5 = vld [vmem:[#allocation4 + $0x28] sm:$0xff]  ;;  %v308_v6 = vld [vmem:[#allocation2 + $0x20] sm:$0xff]  ;;  %v307_v8 = vld [vmem:[#allocation2 + $0x18] sm:$0xff] }
   0xe   :  { %v316_v7 = vld [vmem:[#allocation4 + $0x20] sm:$0xff]  ;;  %v306_v9 = vld [vmem:[#allocation2 + $0x10] sm:$0xff]  ;;  %v305_v10 = vld [vmem:[#allocation2 + $0x8] sm:$0xff] }
   0xf   :  { %v304_v11 = vld [vmem:[#allocation2] sm:$0xff]  ;;  %v315_v13 = vld [vmem:[#allocation4 + $0x18] sm:$0xff]  ;;  %v314_v14 = vld [vmem:[#allocation4 + $0x10] sm:$0xff] }
  0x10   :  { %129 = vmatpush.bf16.msra.mxu0 %v310_v1  ;;  %v303_v12 = vld [vmem:[%s433_s0] sm:$0xff]  ;;  %v313_v15 = vld [vmem:[#allocation4 + $0x8] sm:$0xff] }
  0x11   :  { %214 = vmatpush.bf16.msra.mxu1 %v318_v3  ;;  %v312_v16 = vld [vmem:[#allocation4] sm:$0xff] }
  0x12   :  { %v324_v18 = vld [vmem:[%s435_s2] ss:$0 sm:$0xff] }
  0x13   :  { %v325_v25 = vld [vmem:[%s437_s4] ss:$0 sm:$0xff] }
  0x14   :  { %130 = vmatpush.bf16.msra.mxu0 %v309_v4 }
  0x15   :  { %215 = vmatpush.bf16.msra.mxu1 %v317_v5 }
  0x18   :  { %131 = vmatpush.bf16.msra.mxu0 %v308_v6 }
  0x19   :  { %216 = vmatpush.bf16.msra.mxu1 %v316_v7 }
  0x1c   :  { %132 = vmatpush.bf16.msra.mxu0 %v307_v8 }
  0x1d   :  { %217 = vmatpush.bf16.msra.mxu1 %v315_v13 }
  0x20   :  { %133 = vmatpush.bf16.msra.mxu0 %v306_v9 }
  0x21   :  { %218 = vmatpush.bf16.msra.mxu1 %v314_v14 }
  0x24   :  { %134 = vmatpush.bf16.msra.mxu0 %v305_v10 }
  0x25   :  { %219 = vmatpush.bf16.msra.mxu1 %v313_v15 }
  0x28   :  { %135 = vmatpush.bf16.msra.mxu0 %v304_v11 }
  0x29   :  { %220 = vmatpush.bf16.msra.mxu1 %v312_v16 }
  0x2b   :  { %136 = vmatmul.bf16.vlgmr.msra.gmra.mxu0 %v303_v12 }
  0xa8   :  { %v137_v17 = vpop.f32.mrf.mxu0 }
  0xa9   :  { %v138_v19 = vadd.f32 %v324_v18, %v137_v17 }
  0xab   :  { %v142_v22 = vmax.f32 %v138_v19, 0.0 }
  0xb0   :  { %v139_v20 = vpop.f32.mrf.mxu0 }
  0xb1   :  { %v140_v21 = vadd.f32 %v324_v18, %v139_v20 }
  0xb3   :  { %v143_v23 = vmax.f32 %v140_v21, 0.0 }
  0xb5   :  { %v144_v24 = vpack.c.bf16 %v143_v23, %v142_v22 }
  0xb7   :  { %221 = vmatmul.bf16.vlgmr.msra.gmra.mxu1 %v144_v24 }
 0x134   :  { %v222_v26 = vpop.f32.mrf.mxu1 }
 0x135   :  { %v223_v27 = vadd.f32 %v325_v25, %v222_v26 }
 0x137   :  { %227 = vst [vmem:[%s438_s5] sm:$0xff] %v223_v27 }
 0x13c   :  { %v224_v28 = vpop.f32.mrf.mxu1 }
 0x13d   :  { %v225_v29 = vadd.f32 %v325_v25, %v224_v28 }
 0x13f   :  { %228 = vst [vmem:[%s438_s5 + $0x8] sm:$0xff] %v225_v29 }
 0x140   :  { %233 = vsyncpa [#allocation3], 1 }
 0x141   :  { %234 = vsyncpa [#allocation5], 1 }

</bundles_post_ra>
